<compile_context>
chip_gen: v7x
topology: tpu7x:2x2x1
jax: 0.10.0
libtpu: 0.0.40
codegen_flags: <defaults>
</compile_context>

<pallas_src>
import functools

import jax
import jax.numpy as jnp
from jax.experimental import pallas as pl
from jax.experimental.pallas import tpu as pltpu


def _round_up(a, b):
    return (a + b - 1) // b * b


def _patch_embed_kernel(x_ref, w_ref, b_ref, g_ref, beta_ref, o_ref, *, true_e):
    # x_ref: (tm, K) patch rows (native dtype); w_ref: (K, E_pad);
    # b/g/beta: (1, E_pad); o_ref: (tm, E_pad).
    # Native-dtype operands feed the MXU; accumulate in f32.
    y = jnp.dot(x_ref[...], w_ref[...], preferred_element_type=jnp.float32)
    y = y + b_ref[...].astype(jnp.float32)

    e_pad = y.shape[-1]
    if true_e == e_pad:
        # Lane-dense embed dim already; plain two-pass LayerNorm.
        mean = jnp.mean(y, axis=-1, keepdims=True)
        centered = y - mean
        var = jnp.mean(centered * centered, axis=-1, keepdims=True)
    else:
        # embed_dim was padded to a multiple of 128 for lane-dense stores.
        # Padded weight/bias columns are zero, so padded y columns are exactly
        # zero; normalize statistics over the true embed_dim only.
        col = jax.lax.broadcasted_iota(jnp.int32, y.shape, dimension=1)
        valid = col < true_e
        inv_e = 1.0 / true_e
        mean = jnp.sum(jnp.where(valid, y, 0.0), axis=-1, keepdims=True) * inv_e
        centered = jnp.where(valid, y - mean, 0.0)
        var = jnp.sum(centered * centered, axis=-1, keepdims=True) * inv_e

    y_hat = centered * jax.lax.rsqrt(var + 1e-5)
    out = y_hat * g_ref[...].astype(jnp.float32) + beta_ref[...].astype(jnp.float32)
    o_ref[...] = out.astype(o_ref.dtype)


def _pick_row_tile(M, K, E_pad, in_bytes, tm):
    """Largest multiple-of-8 row tile that (a) keeps >= 2 grid steps when there
    is enough work (so both v7x TensorCores are fed) and (b) fits a
    conservative VMEM budget (double-buffered in/out tiles + resident weight),
    sized for the smallest (v7x, 64 MiB / 32 MiB scoped) part."""
    if tm is None:
        tm = 512
    if M > 8:
        tm = min(tm, _round_up(pl.cdiv(M, 2), 8))
    else:
        tm = min(tm, _round_up(max(M, 1), 8))
    tm = max(8, _round_up(tm, 8))

    budget = 12 * 1024 * 1024
    while tm > 8:
        need = (2 * tm * K * in_bytes          # double-buffered input tile
                + 2 * tm * E_pad * 4           # double-buffered output tile
                + 2 * K * E_pad * in_bytes)    # (double-buffered) weight
        if need <= budget:
            break
        tm = max(8, _round_up(tm // 2, 8))
    return tm


def patch_embed_forward(x, w_conv, b_conv, gamma, beta, *, patch_size, tm=None):
    """x: (B, C, H, W). w_conv: (E, C, P, P). Returns (B, num_patches, E)."""
    B, C, H, W = x.shape
    E = w_conv.shape[0]
    P = patch_size
    Gh, Gw = H // P, W // P
    num_patches = Gh * Gw
    M = B * num_patches
    K = C * P * P

    # --- glue: extract patches into (M, K), K ordered as (c, ph, pw) ---
    # TODO(synk): avoid the HBM-materialized transpose by fusing patch
    # extraction into the kernel's input DMA (allow_input_fusion / index_map
    # over the 6-D view); kept as wrapper glue here for lowering robustness.
    patches = x.reshape(B, C, Gh, P, Gw, P)
    patches = jnp.transpose(patches, (0, 2, 4, 1, 3, 5))       # (B,Gh,Gw,C,P,P)
    patches = patches.reshape(M, K)

    # --- glue: conv weight -> (K, E) matmul weight, same (c, ph, pw) order ---
    w_mat = w_conv.reshape(E, K).T                              # (K, E)

    # Lane-dense embed dim: pad E up to a multiple of 128 (>= 128) so output
    # stores are full-lane; padded columns are zero and sliced off afterwards.
    E_pad = _round_up(max(E, 128), 128)
    if E_pad != E:
        w_mat = jnp.pad(w_mat, ((0, 0), (0, E_pad - E)))
        b_row = jnp.pad(b_conv.reshape(1, E), ((0, 0), (0, E_pad - E)))
        g_row = jnp.pad(gamma.reshape(1, E), ((0, 0), (0, E_pad - E)))
        beta_row = jnp.pad(beta.reshape(1, E), ((0, 0), (0, E_pad - E)))
    else:
        b_row = b_conv.reshape(1, E)
        g_row = gamma.reshape(1, E)
        beta_row = beta.reshape(1, E)

    # Row tile: large (MXU-filling); tail handled by padding M, not asserting.
    tm_eff = _pick_row_tile(M, K, E_pad, x.dtype.itemsize, tm)
    M_pad = _round_up(M, tm_eff)
    if M_pad != M:
        patches = jnp.pad(patches, ((0, M_pad - M), (0, 0)))

    grid = (M_pad // tm_eff,)
    kernel = functools.partial(_patch_embed_kernel, true_e=E)

    out = pl.pallas_call(
        kernel,
        out_shape=jax.ShapeDtypeStruct((M_pad, E_pad), x.dtype),
        grid_spec=pltpu.PrefetchScalarGridSpec(
            num_scalar_prefetch=0,
            grid=grid,
            in_specs=[
                pl.BlockSpec((tm_eff, K), lambda i: (i, 0)),    # patch rows
                pl.BlockSpec((K, E_pad), lambda i: (0, 0)),     # projection weight
                pl.BlockSpec((1, E_pad), lambda i: (0, 0)),     # conv bias
                pl.BlockSpec((1, E_pad), lambda i: (0, 0)),     # LN gamma
                pl.BlockSpec((1, E_pad), lambda i: (0, 0)),     # LN beta
            ],
            out_specs=pl.BlockSpec((tm_eff, E_pad), lambda i: (i, 0)),
        ),
        compiler_params=pltpu.CompilerParams(
            dimension_semantics=("parallel",),
            vmem_limit_bytes=32 * 1024 * 1024,
        ),
        cost_estimate=pl.CostEstimate(
            flops=2 * M_pad * K * E_pad,
            transcendentals=0,
            bytes_accessed=(M_pad * K + K * E_pad + M_pad * E_pad)
            * x.dtype.itemsize,
        ),
    )(patches, w_mat, b_row, g_row, beta_row)

    return out[:M, :E].reshape(B, num_patches, E)


def _reference(x, w_conv, b_conv, gamma, beta, patch_size):
    """Plain-JAX reference matching PyTorch PatchEmbed.forward semantics."""
    y = jax.lax.conv_general_dilated(
        x, w_conv, window_strides=(patch_size, patch_size), padding="VALID",
        dimension_numbers=("NCHW", "OIHW", "NCHW"))
    y = y + b_conv[None, :, None, None]
    B, E, Gh, Gw = y.shape
    y = y.reshape(B, E, Gh * Gw).transpose(0, 2, 1)             # (B, N, E)
    mean = jnp.mean(y, axis=-1, keepdims=True)
    var = jnp.mean((y - mean) ** 2, axis=-1, keepdims=True)
    return (y - mean) / jnp.sqrt(var + 1e-5) * gamma + beta


if __name__ == "__main__":
    # Small shapes consistent with the module: img=16, patch=4, C=4, E=32, B=2.
    B, C, H, W = 2, 4, 16, 16
    P = 4
    E = 32

    key = jax.random.PRNGKey(0)
    kx, kw, kb = jax.random.split(key, 3)
    x = jax.random.normal(kx, (B, C, H, W), dtype=jnp.float32)
    w_conv = jax.random.normal(kw, (E, C, P, P), dtype=jnp.float32) * 0.02
    b_conv = jax.random.normal(kb, (E,), dtype=jnp.float32) * 0.02
    gamma = jnp.ones((E,), dtype=jnp.float32)
    beta = jnp.zeros((E,), dtype=jnp.float32)

    fwd = jax.jit(patch_embed_forward, static_argnames=("patch_size", "tm"))
    out = fwd(x, w_conv, b_conv, gamma, beta, patch_size=P)
    out = jax.block_until_ready(out)

    ref = _reference(x, w_conv, b_conv, gamma, beta, patch_size=P)
    assert out.shape == (B, (H // P) * (W // P), E), out.shape
    assert jnp.allclose(out, ref, atol=1e-4, rtol=1e-4), "mismatch vs reference"

    print("KERNEL_OK")
</pallas_src>

<mosaic_0001>
module attributes {stable_mosaic.version = 11 : i64} {
  func.func @_patch_embed_kernel(%arg0: i32, %arg1: memref<16x64xf32, #tpu.memory_space<vmem>>, %arg2: memref<64x128xf32, #tpu.memory_space<vmem>>, %arg3: memref<1x128xf32, #tpu.memory_space<vmem>>, %arg4: memref<1x128xf32, #tpu.memory_space<vmem>>, %arg5: memref<1x128xf32, #tpu.memory_space<vmem>>, %arg6: memref<16x128xf32, #tpu.memory_space<vmem>>) attributes {dimension_semantics = [#tpu.dimension_semantics<parallel>], iteration_bounds = array<i64: 2>, scalar_prefetch = 0 : i64, scratch_operands = 0 : i64, tpu.core_type = #tpu.core_type<tc>, window_params = [{transform_indices = @transform_0, window_bounds = array<i64: 16, 64>}, {pipeline_mode = #tpu.pipeline_mode<synchronous>, transform_indices = @transform_1, window_bounds = array<i64: 64, 128>}, {pipeline_mode = #tpu.pipeline_mode<synchronous>, transform_indices = @transform_2, window_bounds = array<i64: 1, 128>}, {pipeline_mode = #tpu.pipeline_mode<synchronous>, transform_indices = @transform_3, window_bounds = array<i64: 1, 128>}, {pipeline_mode = #tpu.pipeline_mode<synchronous>, transform_indices = @transform_4, window_bounds = array<i64: 1, 128>}, {transform_indices = @transform_5, window_bounds = array<i64: 16, 128>}]} {
    %c0 = arith.constant 0 : index
    %c0_0 = arith.constant 0 : index
    %0 = vector.load %arg1[%c0, %c0_0] : memref<16x64xf32, #tpu.memory_space<vmem>>, vector<16x64xf32>
    %c0_1 = arith.constant 0 : index
    %c0_2 = arith.constant 0 : index
    %1 = vector.load %arg2[%c0_1, %c0_2] : memref<64x128xf32, #tpu.memory_space<vmem>>, vector<64x128xf32>
    %cst = arith.constant dense<0.000000e+00> : vector<16x128xf32>
    %2 = tpu.matmul %0, %1, %cst {dimension_numbers = #tpu.dot_dimension_numbers<[1], [0], [0], [1], [0, 0, 1, 1], [], []>} : vector<16x64xf32>, vector<64x128xf32>, vector<16x128xf32> -> vector<16x128xf32>
    %c0_3 = arith.constant 0 : index
    %c0_4 = arith.constant 0 : index
    %3 = vector.load %arg3[%c0_3, %c0_4] : memref<1x128xf32, #tpu.memory_space<vmem>>, vector<1x128xf32>
    %4 = vector.broadcast %3 : vector<1x128xf32> to vector<16x128xf32>
    %5 = arith.addf %2, %4 : vector<16x128xf32>
    %6 = tpu.iota {dimensions = array<i32: 1>} : vector<16x128xi32>
    %c32_i32 = arith.constant 32 : i32
    %7 = vector.broadcast %c32_i32 : i32 to vector<16x128xi32>
    %8 = arith.cmpi slt, %6, %7 : vector<16x128xi32>
    %cst_5 = arith.constant 0.000000e+00 : f32
    %9 = vector.broadcast %cst_5 : f32 to vector<16x128xf32>
    %10 = arith.select %8, %5, %9 : vector<16x128xi1>, vector<16x128xf32>
    %cst_6 = arith.constant dense<0.000000e+00> : vector<16xf32>
    %11 = vector.multi_reduction <add>, %10, %cst_6 [1] : vector<16x128xf32> to vector<16xf32>
    %12 = vector.shape_cast %11 : vector<16xf32> to vector<16x1xf32>
    %cst_7 = arith.constant 3.125000e-02 : f32
    %13 = vector.broadcast %cst_7 : f32 to vector<16x1xf32>
    %14 = arith.mulf %12, %13 : vector<16x1xf32>
    %15 = vector.broadcast %14 : vector<16x1xf32> to vector<16x128xf32>
    %16 = arith.subf %5, %15 : vector<16x128xf32>
    %cst_8 = arith.constant 0.000000e+00 : f32
    %17 = vector.broadcast %cst_8 : f32 to vector<16x128xf32>
    %18 = arith.select %8, %16, %17 : vector<16x128xi1>, vector<16x128xf32>
    %19 = arith.mulf %18, %18 : vector<16x128xf32>
    %cst_9 = arith.constant dense<0.000000e+00> : vector<16xf32>
    %20 = vector.multi_reduction <add>, %19, %cst_9 [1] : vector<16x128xf32> to vector<16xf32>
    %21 = vector.shape_cast %20 : vector<16xf32> to vector<16x1xf32>
    %cst_10 = arith.constant 3.125000e-02 : f32
    %22 = vector.broadcast %cst_10 : f32 to vector<16x1xf32>
    %23 = arith.mulf %21, %22 : vector<16x1xf32>
    %cst_11 = arith.constant 9.99999974E-6 : f32
    %24 = vector.broadcast %cst_11 : f32 to vector<16x1xf32>
    %25 = arith.addf %23, %24 : vector<16x1xf32>
    %26 = math.rsqrt %25 : vector<16x1xf32>
    %27 = vector.broadcast %26 : vector<16x1xf32> to vector<16x128xf32>
    %28 = arith.mulf %18, %27 : vector<16x128xf32>
    %c0_12 = arith.constant 0 : index
    %c0_13 = arith.constant 0 : index
    %29 = vector.load %arg4[%c0_12, %c0_13] : memref<1x128xf32, #tpu.memory_space<vmem>>, vector<1x128xf32>
    %30 = vector.broadcast %29 : vector<1x128xf32> to vector<16x128xf32>
    %31 = arith.mulf %28, %30 : vector<16x128xf32>
    %c0_14 = arith.constant 0 : index
    %c0_15 = arith.constant 0 : index
    %32 = vector.load %arg5[%c0_14, %c0_15] : memref<1x128xf32, #tpu.memory_space<vmem>>, vector<1x128xf32>
    %33 = vector.broadcast %32 : vector<1x128xf32> to vector<16x128xf32>
    %34 = arith.addf %31, %33 : vector<16x128xf32>
    %c0_16 = arith.constant 0 : index
    %c0_17 = arith.constant 0 : index
    %35 = vector.load %arg6[%c0_16, %c0_17] : memref<16x128xf32, #tpu.memory_space<vmem>>, vector<16x128xf32>
    tpu.vector_store %arg6[%c0_16, %c0_17], %34 {strides = array<i32>} : memref<16x128xf32, #tpu.memory_space<vmem>>, vector<16x128xf32>,
    return
  }
  func.func @transform_0(%arg0: i32) -> (i32, i32) {
    %c0_i32 = arith.constant 0 : i32
    %c0_i32_0 = arith.constant 0 : i32
    return %arg0, %c0_i32 : i32, i32
  }
  func.func @transform_1(%arg0: i32) -> (i32, i32) {
    %c0_i32 = arith.constant 0 : i32
    %c0_i32_0 = arith.constant 0 : i32
    %c0_i32_1 = arith.constant 0 : i32
    return %c0_i32, %c0_i32_0 : i32, i32
  }
  func.func @transform_2(%arg0: i32) -> (i32, i32) {
    %c0_i32 = arith.constant 0 : i32
    %c0_i32_0 = arith.constant 0 : i32
    %c0_i32_1 = arith.constant 0 : i32
    return %c0_i32, %c0_i32_0 : i32, i32
  }
  func.func @transform_3(%arg0: i32) -> (i32, i32) {
    %c0_i32 = arith.constant 0 : i32
    %c0_i32_0 = arith.constant 0 : i32
    %c0_i32_1 = arith.constant 0 : i32
    return %c0_i32, %c0_i32_0 : i32, i32
  }
  func.func @transform_4(%arg0: i32) -> (i32, i32) {
    %c0_i32 = arith.constant 0 : i32
    %c0_i32_0 = arith.constant 0 : i32
    %c0_i32_1 = arith.constant 0 : i32
    return %c0_i32, %c0_i32_0 : i32, i32
  }
  func.func @transform_5(%arg0: i32) -> (i32, i32) {
    %c0_i32 = arith.constant 0 : i32
    %c0_i32_0 = arith.constant 0 : i32
    return %arg0, %c0_i32 : i32, i32
  }
}

</mosaic_0001>

<bundles_post_ra>
// kernel: patch_embed_forward.1
= control target key start
LH: loop header
LB: loop body
LE: loop exit
PB: predicated region body
PF: predicated region fallthrough
CT: control target
= control target key end

     0   :  { %10 = vsyncpa [#allocation3], 0  ;;  %s794_s0 = inlined_call_operand.vmem [shape: f32[32,64], index: 0, kind: input, shape index: {}]   ;;  %s795_s1 = inlined_call_operand.vmem [shape: f32[64,128], index: 1, kind: input, shape index: {}]   ;;  %s796_s2 = inlined_call_operand.vmem [shape: f32[1,128], index: 2, kind: input, shape index: {}]   ;;  %s797_s3 = inlined_call_operand.vmem [shape: f32[1,128], index: 3, kind: input, shape index: {}]   ;;  %s798_s4 = inlined_call_operand.vmem [shape: f32[1,128], index: 4, kind: input, shape index: {}]   ;;  %s799_s5 = inlined_call_operand.hbm [shape: f32[32,128], index: 5, kind: output, shape index: {}]  }
   0x1   :  { %12 = vsyncpa [#allocation3 + $0x1], 0  ;;  %s655_s18 = smov 0   ;;  %s657_s19 = smov 0  }
   0x2   :  { %s659_s20 = smov 0   ;;  %s661_s21 = smov 0  }
   0x3 LB: > { %s676_s22 = sadd.s32 4294967295, %s620_s21   ;;  %s450_s23 = sadd.s32 4294967294, %s620_s21   ;;  %s620_s21 = sphi %s661_s21, %s805_s21   ;;  %s616_s20 = sphi %s659_s20, %s804_s20   ;;  %s612_s19 = sphi %s657_s19, %s803_s19   ;;  %s608_s18 = sphi %s655_s18, %s802_s18  }
   0x4   : > { %s680_s24 = sadd.s32 1, %s620_s21   ;;  %s135_s25 = sadd.s32 1, %s616_s20 }
   0x5   : > { %s132_s26 = ssub.s32 %s620_s21, %s680_s24  ;;  %p145_p0 = scmp.ne.s32.totalorder %s616_s20, %s612_s19 }
   0x6   : > { %p133_p1 = scmp.eq.s32.totalorder %s132_s26, 0  ;;  %p146_p2 = scmp.eq.s32.totalorder %s676_s22, 1 }
   0x7   : > { %p151_p3 = scmp.ne.s32.totalorder %s612_s19, %s608_s18  ;;  %p152_p4 = scmp.eq.s32.totalorder %s450_s23, 1 }
   0x8   : > { %s691_s27 = scalar_select %p133_p1, %s616_s20, %s135_s25  }
   0x9   : > { %p693_p5 = por %p146_p2, %p145_p0  ;;  %p697_p6 = por %p152_p4, %p151_p3 }
   0xa   : > { %p453_p7 = scmp.ge.s32.totalorder %s620_s21, 1  ;;  %p191_p8 = scmp.lt.s32.totalorder %s620_s21, 3 }
   0xc   : > { %p192_p9 = pnand %p453_p7, %p191_p8 }
   0xd   : > { %v228_v0 = vld [vmem:[%s795_s1] sm:$0xff] (!%p192_p9)  ;;  %v229_v1 = vld [vmem:[%s795_s1 + $0x8] sm:$0xff] (!%p192_p9)  ;;  %v230_v2 = vld [vmem:[%s795_s1 + $0x10] sm:$0xff] (!%p192_p9)  ;;  %s455_s11 = sshll.u32 (!%p192_p9), %s676_s22, 1  ;;  %vm243_vm0 = vcmask (!%p192_p9), 523264   ;;  %v325_v14 = vlaneseq (!%p192_p9)  ;;  %s216_s12 = sand.u32 (!%p192_p9), 1, %s612_s19  }
   0xe   : > { %195 = sbr.rel (%p192_p9) target bundleno = 579 (0x243), region = 40  ;;  %v497_v3 = vpack.c.bf16 (!%p192_p9), %v229_v1, %v228_v0  ;;  %v231_v4 = vld [vmem:[%s795_s1 + $0x18] sm:$0xff] (!%p192_p9)  ;;  %p220_p10 = scmp.lt.s32.totalorder (!%p192_p9), %s455_s11, 3  ;;  %v232_v6 = vld [vmem:[%s795_s1 + $0x20] sm:$0xff] (!%p192_p9)  ;;  %v233_v7 = vld [vmem:[%s795_s1 + $0x28] sm:$0xff] (!%p192_p9) }
   0xf   : > { %v501_v5 = vpack.c.bf16 (!%p192_p9), %v231_v4, %v230_v2  ;;  %v505_v8 = vpack.c.bf16 (!%p192_p9), %v233_v7, %v232_v6  ;;  %v234_v9 = vld [vmem:[%s795_s1 + $0x30] sm:$0xff] (!%p192_p9)  ;;  %v235_v10 = vld [vmem:[%s795_s1 + $0x38] sm:$0xff] (!%p192_p9)  ;;  %v326_v15 = vand.u32 (!%p192_p9), 127, %v325_v14  ;;  %v457_v16 = vld [vmem:[%s796_s2] ss:$0 sm:$0xff] (!%p192_p9)  ;;  %s454_s15 = sshll.u32 (!%p192_p9), %s216_s12, 4 }
  0x10   : > { %498 = vmatprep.subr.bf16.mxu0 (!%p192_p9), %v497_v3  ;;  %v509_v12 = vpack.c.bf16 (!%p192_p9), %v235_v10, %v234_v9  ;;  %v460_v40 = vld [vmem:[%s797_s3] ss:$0 sm:$0xff] (!%p192_p9)  ;;  %s218_s25 = scalar_lea.vmem (!%p192_p9), [#allocation2], %s454_s15  ;;  %s753_s8 = scalar_lea.sflag (!%p192_p9), [#allocation3], %s216_s12 }
  0x11   : > { %500 = vmatpush3.bf16.msra.mxu0 (!%p192_p9), %v497_v3  ;;  %vm327_vm1 = vcmp.lt.s32.totalorder (!%p192_p9), %v326_v15, 32  ;;  %v461_v42 = vld [vmem:[%s798_s4] ss:$0 sm:$0xff] (!%p192_p9)  ;;  %s388_s26 = sshll.u32 (!%p192_p9), %s218_s25, 4  ;;  %s751_s26 = int_to_ptr.vmem [resolvable:$true] %s388_s26 }
  0x12   : > { %502 = vmatprep.subr.bf16.mxu0 (!%p192_p9), %v501_v5 }
  0x15   : > { %s807_s11 = smov (!%p220_p10, %s455_s11), 3  ;;  %504 = vmatpush3.bf16.msra.mxu0 %v501_v5 }
  0x16   : > { %s456_s23 = sshll.u32 %s807_s11, 3  ;;  %506 = vmatprep.subr.bf16.mxu0 %v505_v8 }
  0x17   : > { %s223_s9 = scalar_lea.vmem %s794_s0, %s456_s23  ;;  %s467_s23 = sshll.u32 %s676_s22, 8 }
  0x18   : > { %v226_v11 = vld [vmem:[%s223_s9] sm:$0xff]  ;;  %v227_v13 = vld [vmem:[%s223_s9 + $0x8] sm:$0xff]  ;;  %s749_s7 = scalar_lea.hbm %s799_s5, %s467_s23  ;;  %s558_s9 = scalar_lea.vmem %s751_s26, 256 }
  0x19   : > { %494 = vmatprep.mubr.msk.f32.mxu0 %vm243_vm0, %v226_v11  ;;  %508 = vmatpush3.bf16.msra.mxu0 %v505_v8  ;;  %p559_p11 = scmp.ne.s32.totalorder %s751_s26, %s558_s9  ;;  %s622_s22 = smov [#allocation2]  }
  0x1a   : > { %510 = vmatprep.subr.bf16.mxu0 %v509_v12  ;;  %s562_s10 = sshll.u32 %s622_s22, 4  ;;  %s563_s10 = int_to_ptr.vmem [resolvable:$false] %s562_s10 }
  0x1b   : > { %p560_p12 = pnand %p559_p11, %p693_p5  ;;  %s564_s11 = scalar_lea.vmem %s563_s10, 512 }
  0x1c   : > { %p565_p0 = scmp.lt.s32.totalorder %s751_s26, %s563_s10  ;;  %p566_p1 = scmp.lt.s32.totalorder %s564_s11, %s558_s9 }
  0x1d   : > { %512 = vmatpush3.bf16.msra.mxu0 %v509_v12  ;;  %p561_p13 = pneg %p560_p12 }
  0x1e   : > { %p567_p2 = por %p566_p1, %p565_p0 }
  0x20   : > { %495 = vmatmul.mubr.msk.f32.vlgmr.msra.gmra.mrb[0].mxu0 %vm243_vm0, %v227_v13  ;;  %p568_p3 = pnand %p567_p2, %p561_p13 }
  0xf3   : > { %v496_v17 = vpop.f32.mrb[0].mxu0 }
  0xf4   : > { %v316_v18 = vpop.f32.mrb[1].mxu0  ;;  %v322_v20 = vadd.f32 %v496_v17, %v457_v16 }
  0xf5   : > { %v317_v19 = vadd.f32 %v457_v16, %v316_v18 }
  0xf6   : > { %v329_v22 = vsel %vm327_vm1, %v322_v20, 0.0 }
  0xf7   : > { %v328_v21 = vsel %vm327_vm1, %v317_v19, 0.0 }
  0xf8   : > { %330 = vadd.xlane.f32.xlu0 %v328_v21 }
  0xfc   : > { %332 = vadd.xlane.f32.xlu0 %v329_v22 }
 0x185   : > { %v331_v23 = vpop.xlane.xlu0 %330 }
 0x186   : > { %v334_v24 = vmul.f32 0.03125, %v331_v23 }
 0x188   : > { %v336_v25 = vsub.f32 %v317_v19, %v334_v24 }
 0x189   : > { %v333_v26 = vpop.xlane.xlu0 %332 }
 0x18a   : > { %v335_v27 = vmul.f32 0.03125, %v333_v26  ;;  %v338_v28 = vsel %vm327_vm1, %v336_v25, 0.0 }
 0x18b   : > { %v340_v29 = vmul.f32 %v338_v28, %v338_v28 }
 0x18c   : > { %v337_v30 = vsub.f32 %v322_v20, %v335_v27 }
 0x18d   : > { %342 = vadd.xlane.f32.xlu1 %v340_v29 }
 0x18e   : > { %v339_v31 = vsel %vm327_vm1, %v337_v30, 0.0 }
 0x18f   : > { %v341_v32 = vmul.f32 %v339_v31, %v339_v31 }
 0x191   : > { %344 = vadd.xlane.f32.xlu1 %v341_v32 }
 0x21a   : > { %v343_v33 = vpop.xlane.xlu1 %342 }
 0x21b   : > { %v346_v34 = vmul.f32 0.03125, %v343_v33 }
 0x21d   : > { %v348_v35 = vadd.f32 1e-05, %v346_v34 }
 0x21e   : > { %v345_v36 = vpop.xlane.xlu1 %344 }
 0x21f   : > { %554 = vrsqrt.f32 %v348_v35  ;;  %v347_v37 = vmul.f32 0.03125, %v345_v36 }
 0x221   : > { %v349_v38 = vadd.f32 1e-05, %v347_v37 }
 0x223   : > { %556 = vrsqrt.f32 %v349_v38 }
 0x229   : > { %v555_v39 = vpop.eup %554 }
 0x22a   : > { %v352_v41 = vmul.f32 %v555_v39, %v338_v28 }
 0x22c   : > { %v361_v43 = vmul.f32 %v460_v40, %v352_v41 }
 0x22d   : > { %v557_v44 = vpop.eup %556 }
 0x22e   : > { %v353_v45 = vmul.f32 %v557_v44, %v339_v31  ;;  %v370_v46 = vadd.f32 %v461_v42, %v361_v43 }
 0x230   : > { %v362_v47 = vmul.f32 %v460_v40, %v353_v45  ;;  %372 = vst [vmem:[%s218_s25] sm:$0xff] %v370_v46 }
 0x232   : > { %v371_v48 = vadd.f32 %v461_v42, %v362_v47 }
 0x234   : > { %373 = vst [vmem:[%s218_s25 + $0x8] sm:$0xff] %v371_v48 }
 0x235   : > { %571 = shalt.err (!%p568_p3)
}
 0x236   : > { %s572_s12 = scalar_lea.hbm %s749_s7, 256  ;;  %s576_s15 = scalar_lea.hbm %s799_s5, 512 }
 0x237   : > { %p573_p4 = scmp.ne.s32.totalorder %s749_s7, %s572_s12  ;;  %p577_p9 = scmp.lt.u32.totalorder %s749_s7, %s799_s5 }
 0x238   : > { %p578_p10 = scmp.lt.u32.totalorder %s576_s15, %s572_s12  ;;  %p580_p12 = scmp.lt.u32.totalorder %s572_s12, %s749_s7 }
 0x239   : > { %p574_p7 = pnand %p573_p4, %p693_p5 }
 0x23a   : > { %p579_p11 = por %p578_p10, %p577_p9 }
 0x23b   : > { %p575_p8 = pneg %p574_p7 }
 0x23c   : > { %p581_p13 = por %p580_p12, %p579_p11 }
 0x23e   : > { %p582_p0 = pnand %p581_p13, %p575_p8 }
 0x240   : > { %585 = shalt.err (!%p582_p0)
}
 0x241   : > { %s623_s23 = smov 128   ;;  %s624_s25 = smov 8  }
 0x242   : > { %513 = dma.vmem_to_hbm [thread:$0]  (%p693_p5), %s751_s26, 256, %s749_s7, %s753_s8, %s623_s23, %s623_s23, %s624_s25  }
 0x243 PF: > { %p519_p1 = scmp.ge.s32.totalorder %s620_s21, 2  ;;  %s403_s30 = sand.u32 1, %s608_s18  }
 0x244   : > { %s404_s6 = scalar_lea.sflag [#allocation3], %s403_s30 }
 0x245   : > { %p516_p2 = pnand %p519_p1, %p697_p6 }
 0x247   : > { %603 = dma.done.wait (!%p516_p2), %s404_s6, 256  }
 0x248   : > { %605 = vsyncadd (!%p516_p2), %s404_s6, 4294967040  ;;  %p15_p3 = scmp.ge.s32.totalorder %s680_s24, 4   ;;  %s802_s18 = smov %s612_s19 }
 0x249   : > { %s803_s19 = smov %s616_s20  ;;  %s804_s20 = smov %s691_s27 }
 0x24a   : > { %s805_s21 = smov %s680_s24  ;;  %17 = sbr.rel (!%p15_p3) target bundleno = 3 (0x3), region = 75 }
 0x251   :  { %409 = vsyncpa [#allocation3], 1 }
 0x252   :  { %411 = vsyncpa [#allocation3 + $0x1], 1 }

</bundles_post_ra>
